<compile_context>
chip_gen: v7x
topology: tpu7x:2x2x1
jax: 0.10.0
libtpu: 0.0.40
codegen_flags: <defaults>
</compile_context>

<pallas_src>
import functools

import jax
import jax.numpy as jnp
from jax.experimental import pallas as pl
from jax.experimental.pallas import tpu as pltpu

_SUBLANE = 8


def _round_up(x, m):
    return ((x + m - 1) // m) * m


# ----------------------------- Pallas kernel ------------------------------- #
def _mlp_kernel(x_ref, w1_ref, b1_ref, w2_ref, b2_ref, w3_ref, b3_ref, o_ref):
    cd = w1_ref.dtype  # MXU input dtype is taken from the weights (bf16 or f32)

    # Layer 1: Linear + ReLU. x is f32 in HBM; cast here (cheap VPU work hidden
    # under the DMA) so the wrapper never makes an extra pass over x.
    h1 = jnp.dot(x_ref[...].astype(cd), w1_ref[...],
                 preferred_element_type=jnp.float32)
    h1 = jnp.maximum(h1 + b1_ref[...], 0.0)

    # Layer 2: Linear + ReLU.
    h2 = jnp.dot(h1.astype(w2_ref.dtype), w2_ref[...],
                 preferred_element_type=jnp.float32)
    h2 = jnp.maximum(h2 + b2_ref[...], 0.0)

    # Layer 3: Linear, no activation. Output block is the full (unpadded)
    # out_dim; the masked partial store is hidden under DMA slack.
    out = jnp.dot(h2.astype(w3_ref.dtype), w3_ref[...],
                  preferred_element_type=jnp.float32)
    o_ref[...] = (out + b3_ref[...]).astype(o_ref.dtype)


# ------------------------------- wrapper ------------------------------------ #
@functools.partial(jax.jit, static_argnames=("block_b",))
def predictor_network_forward(x, params, *, block_b=4096):
    """Fused MLP forward. x: [B, in_dim] f32. Returns [B, out_dim] f32.

    params = (w1, b1, w2, b2, w3, b3); weights are [in, out] and their dtype
    (f32 or bf16) selects the MXU input precision. Biases must be f32.
    """
    w1, b1, w2, b2, w3, b3 = params
    B, in_dim = x.shape
    hid = w1.shape[1]
    out_dim = w3.shape[1]

    # Batch tile: multiple of 8 sublanes, capped at ceil(B/2) so the grid has
    # at least 2 tiles whenever possible (megacore sharding on v7x).
    half = _round_up(max(1, -(-B // 2)), _SUBLANE)
    tb = _round_up(max(_SUBLANE, min(block_b, half)), _SUBLANE)
    nb = pl.cdiv(B, tb)  # ragged last block: OOB rows are masked on store

    # Grid-invariant (resident) blocks: constant index_map -> fetched once.
    resident = lambda shape: pl.BlockSpec(shape, lambda i: (0, 0))

    return pl.pallas_call(
        _mlp_kernel,
        out_shape=jax.ShapeDtypeStruct((B, out_dim), jnp.float32),
        grid_spec=pl.GridSpec(
            grid=(nb,),
            in_specs=[
                pl.BlockSpec((tb, in_dim), lambda i: (i, 0)),  # x: tiled on batch
                resident((in_dim, hid)),                       # w1
                resident((1, hid)),                            # b1
                resident((hid, hid)),                          # w2
                resident((1, hid)),                            # b2
                resident((hid, out_dim)),                      # w3
                resident((1, out_dim)),                        # b3
            ],
            out_specs=pl.BlockSpec((tb, out_dim), lambda i: (i, 0)),
        ),
        compiler_params=pltpu.CompilerParams(
            dimension_semantics=("parallel",),  # batch tiles shard across TCs (v7x)
        ),
    )(x, w1, b1, w2, b2, w3, b3)


# --------------------------- parameter handling ----------------------------- #
def _orthogonal(key, rows, cols, gain=1.0, dtype=jnp.float32):
    """Deterministic orthogonal init (QR-based), matching nn.init.orthogonal_ semantics."""
    n = max(rows, cols)
    a = jax.random.normal(key, (n, min(rows, cols)), dtype=jnp.float32)
    q, r = jnp.linalg.qr(a)
    d = jnp.sign(jnp.diagonal(r))
    d = jnp.where(d == 0, 1.0, d)
    q = q * d[None, :]
    w = q[:rows, :cols] if rows >= cols else q[:cols, :rows].T
    return (gain * w).astype(dtype)


def init_predictor_params(key, in_dim, out_dim, hid=128):
    k1, k2, k3 = jax.random.split(key, 3)
    # Stored as [in, out] so the kernel does x @ W.
    w1 = _orthogonal(k1, in_dim, hid)
    w2 = _orthogonal(k2, hid, hid)
    w3 = _orthogonal(k3, hid, out_dim)
    b1 = jnp.zeros((1, hid), jnp.float32)
    b2 = jnp.zeros((1, hid), jnp.float32)
    b3 = jnp.zeros((1, out_dim), jnp.float32)
    return (w1, b1, w2, b2, w3, b3)


def prepare_params(params, compute_dtype=jnp.bfloat16):
    """One-time weight prep, hoisted out of the forward: weights -> compute_dtype,
    biases -> f32. Call once at setup; the jitted forward passes them through."""
    w1, b1, w2, b2, w3, b3 = params
    return (w1.astype(compute_dtype), b1.astype(jnp.float32),
            w2.astype(compute_dtype), b2.astype(jnp.float32),
            w3.astype(compute_dtype), b3.astype(jnp.float32))


# ------------------------------ references --------------------------------- #
def _reference_forward(x, params):
    w1, b1, w2, b2, w3, b3 = params
    h1 = jnp.maximum(x @ w1 + b1, 0.0)
    h2 = jnp.maximum(h1 @ w2 + b2, 0.0)
    return h2 @ w3 + b3


def _reference_forward_lowp(x, params, dtype):
    """Reference mirroring the kernel's mixed precision (bf16 in, f32 accumulate)."""
    w1, b1, w2, b2, w3, b3 = params
    dot = lambda a, b: jnp.dot(a.astype(dtype), b.astype(dtype),
                               preferred_element_type=jnp.float32)
    h1 = jnp.maximum(dot(x, w1) + b1, 0.0)
    h2 = jnp.maximum(dot(h1, w2) + b2, 0.0)
    return dot(h2, w3) + b3


if __name__ == "__main__":
    in_dim, out_dim, hid = 16, 32, 128

    key = jax.random.PRNGKey(0)
    k_x1, k_x2, k_p = jax.random.split(key, 3)
    params_f32 = init_predictor_params(k_p, in_dim, out_dim, hid=hid)

    # Case 1: small batch, single grid tile, f32 weights (parity path).
    x8 = jax.random.normal(k_x1, (8, in_dim), dtype=jnp.float32)
    out_f32 = jax.block_until_ready(predictor_network_forward(x8, params_f32))
    ref_f32 = _reference_forward(x8, params_f32)
    assert out_f32.shape == (8, out_dim), out_f32.shape
    assert jnp.allclose(out_f32, ref_f32, atol=1e-3, rtol=1e-3), "f32 path mismatch"

    # Case 2: bf16 weights (one-time prep), small tile -> 3 grid steps with a
    # ragged last block (20 rows, tb=8), no batch padding and unpadded output.
    params_bf16 = prepare_params(params_f32, jnp.bfloat16)
    x20 = jax.random.normal(k_x2, (20, in_dim), dtype=jnp.float32)
    out_bf16 = jax.block_until_ready(
        predictor_network_forward(x20, params_bf16, block_b=8))  # grid = (3,)
    assert out_bf16.shape == (20, out_dim), out_bf16.shape
    ref_lp = _reference_forward_lowp(x20, params_f32, jnp.bfloat16)
    assert jnp.allclose(out_bf16, ref_lp, atol=1e-2, rtol=1e-2), "bf16 path mismatch"
    ref_hi = _reference_forward(x20, params_f32)
    assert jnp.allclose(out_bf16, ref_hi, atol=1.5e-1, rtol=1.5e-1), "bf16 vs f32 drift"

    # Case 3: default tile -> tb=16, grid=(2,), ragged last block of 4 rows.
    out_default = jax.block_until_ready(
        predictor_network_forward(x20, params_bf16))
    assert jnp.allclose(out_default, out_bf16, atol=1e-3, rtol=1e-3), "tile-size variance"

    print("KERNEL_OK")
</pallas_src>

<mosaic_0001>
module attributes {stable_mosaic.version = 11 : i64} {
  func.func @_mlp_kernel(%arg0: i32, %arg1: memref<8x16xf32, #tpu.memory_space<vmem>>, %arg2: memref<16x128xf32, #tpu.memory_space<vmem>>, %arg3: memref<1x128xf32, #tpu.memory_space<vmem>>, %arg4: memref<128x128xf32, #tpu.memory_space<vmem>>, %arg5: memref<1x128xf32, #tpu.memory_space<vmem>>, %arg6: memref<128x32xf32, #tpu.memory_space<vmem>>, %arg7: memref<1x32xf32, #tpu.memory_space<vmem>>, %arg8: memref<8x32xf32, #tpu.memory_space<vmem>>) attributes {dimension_semantics = [#tpu.dimension_semantics<parallel>], iteration_bounds = array<i64: 1>, scalar_prefetch = 0 : i64, scratch_operands = 0 : i64, tpu.core_type = #tpu.core_type<tc>, window_params = [{transform_indices = @transform_0, window_bounds = array<i64: 8, 16>}, {pipeline_mode = #tpu.pipeline_mode<synchronous>, transform_indices = @transform_1, window_bounds = array<i64: 16, 128>}, {pipeline_mode = #tpu.pipeline_mode<synchronous>, transform_indices = @transform_2, window_bounds = array<i64: 1, 128>}, {pipeline_mode = #tpu.pipeline_mode<synchronous>, transform_indices = @transform_3, window_bounds = array<i64: 128, 128>}, {pipeline_mode = #tpu.pipeline_mode<synchronous>, transform_indices = @transform_4, window_bounds = array<i64: 1, 128>}, {pipeline_mode = #tpu.pipeline_mode<synchronous>, transform_indices = @transform_5, window_bounds = array<i64: 128, 32>}, {pipeline_mode = #tpu.pipeline_mode<synchronous>, transform_indices = @transform_6, window_bounds = array<i64: 1, 32>}, {transform_indices = @transform_7, window_bounds = array<i64: 8, 32>}]} {
    %c0 = arith.constant 0 : index
    %c0_0 = arith.constant 0 : index
    %0 = vector.load %arg1[%c0, %c0_0] : memref<8x16xf32, #tpu.memory_space<vmem>>, vector<8x16xf32>
    %c0_1 = arith.constant 0 : index
    %c0_2 = arith.constant 0 : index
    %1 = vector.load %arg2[%c0_1, %c0_2] : memref<16x128xf32, #tpu.memory_space<vmem>>, vector<16x128xf32>
    %cst = arith.constant dense<0.000000e+00> : vector<8x128xf32>
    %2 = tpu.matmul %0, %1, %cst {dimension_numbers = #tpu.dot_dimension_numbers<[1], [0], [0], [1], [0, 0, 1, 1], [], []>} : vector<8x16xf32>, vector<16x128xf32>, vector<8x128xf32> -> vector<8x128xf32>
    %c0_3 = arith.constant 0 : index
    %c0_4 = arith.constant 0 : index
    %3 = vector.load %arg3[%c0_3, %c0_4] : memref<1x128xf32, #tpu.memory_space<vmem>>, vector<1x128xf32>
    %4 = vector.broadcast %3 : vector<1x128xf32> to vector<8x128xf32>
    %5 = arith.addf %2, %4 : vector<8x128xf32>
    %cst_5 = arith.constant 0.000000e+00 : f32
    %6 = vector.broadcast %cst_5 : f32 to vector<8x128xf32>
    %7 = arith.maximumf %5, %6 : vector<8x128xf32>
    %c0_6 = arith.constant 0 : index
    %c0_7 = arith.constant 0 : index
    %8 = vector.load %arg4[%c0_6, %c0_7] : memref<128x128xf32, #tpu.memory_space<vmem>>, vector<128x128xf32>
    %cst_8 = arith.constant dense<0.000000e+00> : vector<8x128xf32>
    %9 = tpu.matmul %7, %8, %cst_8 {dimension_numbers = #tpu.dot_dimension_numbers<[1], [0], [0], [1], [0, 0, 1, 1], [], []>} : vector<8x128xf32>, vector<128x128xf32>, vector<8x128xf32> -> vector<8x128xf32>
    %c0_9 = arith.constant 0 : index
    %c0_10 = arith.constant 0 : index
    %10 = vector.load %arg5[%c0_9, %c0_10] : memref<1x128xf32, #tpu.memory_space<vmem>>, vector<1x128xf32>
    %11 = vector.broadcast %10 : vector<1x128xf32> to vector<8x128xf32>
    %12 = arith.addf %9, %11 : vector<8x128xf32>
    %cst_11 = arith.constant 0.000000e+00 : f32
    %13 = vector.broadcast %cst_11 : f32 to vector<8x128xf32>
    %14 = arith.maximumf %12, %13 : vector<8x128xf32>
    %c0_12 = arith.constant 0 : index
    %c0_13 = arith.constant 0 : index
    %15 = vector.load %arg6[%c0_12, %c0_13] : memref<128x32xf32, #tpu.memory_space<vmem>>, vector<128x32xf32>
    %cst_14 = arith.constant dense<0.000000e+00> : vector<8x32xf32>
    %16 = tpu.matmul %14, %15, %cst_14 {dimension_numbers = #tpu.dot_dimension_numbers<[1], [0], [0], [1], [0, 0, 1, 1], [], []>} : vector<8x128xf32>, vector<128x32xf32>, vector<8x32xf32> -> vector<8x32xf32>
    %c0_15 = arith.constant 0 : index
    %c0_16 = arith.constant 0 : index
    %17 = vector.load %arg7[%c0_15, %c0_16] : memref<1x32xf32, #tpu.memory_space<vmem>>, vector<1x32xf32>
    %18 = vector.broadcast %17 : vector<1x32xf32> to vector<8x32xf32>
    %19 = arith.addf %16, %18 : vector<8x32xf32>
    %c0_17 = arith.constant 0 : index
    %c0_18 = arith.constant 0 : index
    %20 = vector.load %arg8[%c0_17, %c0_18] : memref<8x32xf32, #tpu.memory_space<vmem>>, vector<8x32xf32>
    tpu.vector_store %arg8[%c0_17, %c0_18], %19 {strides = array<i32>} : memref<8x32xf32, #tpu.memory_space<vmem>>, vector<8x32xf32>,
    return
  }
  func.func @transform_0(%arg0: i32) -> (i32, i32) {
    %c0_i32 = arith.constant 0 : i32
    %c0_i32_0 = arith.constant 0 : i32
    return %arg0, %c0_i32 : i32, i32
  }
  func.func @transform_1(%arg0: i32) -> (i32, i32) {
    %c0_i32 = arith.constant 0 : i32
    %c0_i32_0 = arith.constant 0 : i32
    %c0_i32_1 = arith.constant 0 : i32
    return %c0_i32, %c0_i32_0 : i32, i32
  }
  func.func @transform_2(%arg0: i32) -> (i32, i32) {
    %c0_i32 = arith.constant 0 : i32
    %c0_i32_0 = arith.constant 0 : i32
    %c0_i32_1 = arith.constant 0 : i32
    return %c0_i32, %c0_i32_0 : i32, i32
  }
  func.func @transform_3(%arg0: i32) -> (i32, i32) {
    %c0_i32 = arith.constant 0 : i32
    %c0_i32_0 = arith.constant 0 : i32
    %c0_i32_1 = arith.constant 0 : i32
    return %c0_i32, %c0_i32_0 : i32, i32
  }
  func.func @transform_4(%arg0: i32) -> (i32, i32) {
    %c0_i32 = arith.constant 0 : i32
    %c0_i32_0 = arith.constant 0 : i32
    %c0_i32_1 = arith.constant 0 : i32
    return %c0_i32, %c0_i32_0 : i32, i32
  }
  func.func @transform_5(%arg0: i32) -> (i32, i32) {
    %c0_i32 = arith.constant 0 : i32
    %c0_i32_0 = arith.constant 0 : i32
    %c0_i32_1 = arith.constant 0 : i32
    return %c0_i32, %c0_i32_0 : i32, i32
  }
  func.func @transform_6(%arg0: i32) -> (i32, i32) {
    %c0_i32 = arith.constant 0 : i32
    %c0_i32_0 = arith.constant 0 : i32
    %c0_i32_1 = arith.constant 0 : i32
    return %c0_i32, %c0_i32_0 : i32, i32
  }
  func.func @transform_7(%arg0: i32) -> (i32, i32) {
    %c0_i32 = arith.constant 0 : i32
    %c0_i32_0 = arith.constant 0 : i32
    return %arg0, %c0_i32 : i32, i32
  }
}

</mosaic_0001>

<bundles_post_ra>
// kernel: predictor_network_forward.1
= control target key start
LH: loop header
LB: loop body
LE: loop exit
PB: predicated region body
PF: predicated region fallthrough
CT: control target
= control target key end

     0   :  { %v512_v2 = vmov 0.0|0.0   ;;  %vm513_vm0 = vmmov 0   ;;  %v514_v4 = vmov 0.0   ;;  %vm37_vm1 = vcmask 130048   ;;  %s702_s0 = inlined_call_operand.vmem [shape: f32[8,16], index: 0, kind: input, shape index: {}]   ;;  %s703_s1 = inlined_call_operand.vmem [shape: f32[16,128], index: 1, kind: input, shape index: {}]   ;;  %s704_s2 = inlined_call_operand.vmem [shape: f32[1,128], index: 2, kind: input, shape index: {}]   ;;  %s705_s3 = inlined_call_operand.vmem [shape: f32[128,128], index: 3, kind: input, shape index: {}]   ;;  %s706_s4 = inlined_call_operand.vmem [shape: f32[1,128], index: 4, kind: input, shape index: {}]   ;;  %s707_s5 = inlined_call_operand.vmem [shape: f32[128,32], index: 5, kind: input, shape index: {}]   ;;  %s708_s6 = inlined_call_operand.vmem [shape: f32[1,32], index: 6, kind: input, shape index: {}]   ;;  %s709_s7 = inlined_call_operand.hbm [shape: f32[8,32], index: 7, kind: output, shape index: {}]  }
   0x1   :  { %v28_v0 = vld [vmem:[%s703_s1] sm:$0xff]  ;;  %v29_v1 = vld [vmem:[%s703_s1 + $0x8] sm:$0xff]  ;;  %433 = vmatprep.subr.bf16.mxu0 %v512_v2  ;;  %360 = vmatprep.mubr.msk.f32.mxu0 %vm513_vm0, %v514_v4  ;;  %v114_v7 = vld [vmem:[%s705_s3 + $0x10] sm:$0xff] }
   0x2   :  { %v434_v3 = vpack.c.bf16 %v29_v1, %v28_v0  ;;  %v112_v5 = vld [vmem:[%s705_s3] sm:$0xff]  ;;  %v113_v6 = vld [vmem:[%s705_s3 + $0x8] sm:$0xff]  ;;  %436 = vmatprep.subr.bf16.mxu1 %v512_v2  ;;  %v115_v9 = vld [vmem:[%s705_s3 + $0x18] sm:$0xff]  ;;  %395 = vmatprep.mubr.msk.f32.mxu1 %vm513_vm0, %v514_v4 }
   0x3   :  { %v437_v8 = vpack.c.bf16 %v113_v6, %v112_v5  ;;  %v27_v10 = vld [vmem:[%s702_s0] sm:$0xff]  ;;  %v440_v11 = vpack.c.bf16 %v115_v9, %v114_v7  ;;  %v117_v13 = vld [vmem:[%s705_s3 + $0x28] sm:$0xff] }
   0x4   :  { %435 = vmatpush3.bf16.msra.mxu0 %v434_v3  ;;  %v116_v12 = vld [vmem:[%s705_s3 + $0x20] sm:$0xff] }
   0x5   :  { %438 = vmatpush3.bf16.msra.mxu1 %v437_v8  ;;  %460 = vmatprep.subr.bf16.mxu0 %v512_v2 }
   0x6   :  { %439 = vmatprep.subr.bf16.mxu1 %v512_v2 }
   0x7   :  { %361 = vmatmul.mubr.msk.f32.vlgmr.msra.gmra.mrb[0].mxu0 %vm37_vm1, %v27_v10 }
   0x8   :  { %12 = vsyncpa [#allocation3], 0  ;;  %430 = vmatprep.mubr.msk.f32.mxu0 %vm513_vm0, %v514_v4  ;;  %v443_v14 = vpack.c.bf16 %v117_v13, %v116_v12  ;;  %v118_v15 = vld [vmem:[%s705_s3 + $0x30] sm:$0xff]  ;;  %v119_v16 = vld [vmem:[%s705_s3 + $0x38] sm:$0xff]  ;;  %s515_s22 = smov [#allocation2]   ;;  %vm299_vm2 = vcmask 261120  }
   0x9   :  { %441 = vmatpush3.bf16.msra.mxu1 %v440_v11  ;;  %v446_v17 = vpack.c.bf16 %v119_v16, %v118_v15  ;;  %v120_v18 = vld [vmem:[%s705_s3 + $0x40] sm:$0xff]  ;;  %v121_v19 = vld [vmem:[%s705_s3 + $0x48] sm:$0xff]  ;;  %v122_v21 = vld [vmem:[%s705_s3 + $0x50] sm:$0xff]  ;;  %s307_s23 = sshll.u32 %s515_s22, 4  ;;  %s308_s23 = int_to_ptr.vmem [resolvable:$true] %s307_s23 }
   0xa   :  { %442 = vmatprep.subr.bf16.mxu1 %v512_v2  ;;  %v449_v20 = vpack.c.bf16 %v121_v19, %v120_v18  ;;  %v123_v22 = vld [vmem:[%s705_s3 + $0x58] sm:$0xff]  ;;  %v124_v24 = vld [vmem:[%s705_s3 + $0x60] sm:$0xff]  ;;  %v125_v25 = vld [vmem:[%s705_s3 + $0x68] sm:$0xff]  ;;  %p493_p1 = scmp.lt.s32.totalorder %s308_s23, %s308_s23 }
   0xb   :  { %v452_v23 = vpack.c.bf16 %v123_v22, %v122_v21  ;;  %v455_v26 = vpack.c.bf16 %v125_v25, %v124_v24  ;;  %v126_v27 = vld [vmem:[%s705_s3 + $0x70] sm:$0xff]  ;;  %v127_v28 = vld [vmem:[%s705_s3 + $0x78] sm:$0xff]  ;;  %v206_v30 = vld [vmem:[%s707_s5] sm:$0xff] }
   0xc   :  { %v458_v29 = vpack.c.bf16 %v127_v28, %v126_v27  ;;  %v207_v31 = vld [vmem:[%s707_s5 + $0x8] sm:$0xff]  ;;  %v208_v32 = vld [vmem:[%s707_s5 + $0x10] sm:$0xff]  ;;  %v209_v34 = vld [vmem:[%s707_s5 + $0x18] sm:$0xff] }
   0xd   :  { %444 = vmatpush3.bf16.msra.mxu1 %v443_v14  ;;  %v461_v33 = vpack.c.bf16 %v207_v31, %v206_v30  ;;  %v464_v35 = vpack.c.bf16 %v209_v34, %v208_v32  ;;  %v210_v36 = vld [vmem:[%s707_s5 + $0x20] sm:$0xff]  ;;  %v211_v37 = vld [vmem:[%s707_s5 + $0x28] sm:$0xff]  ;;  %v212_v39 = vld [vmem:[%s707_s5 + $0x30] sm:$0xff] }
   0xe   :  { %445 = vmatprep.subr.bf16.mxu1 %v512_v2  ;;  %v467_v38 = vpack.c.bf16 %v211_v37, %v210_v36  ;;  %v213_v40 = vld [vmem:[%s707_s5 + $0x38] sm:$0xff]  ;;  %v214_v42 = vld [vmem:[%s707_s5 + $0x40] sm:$0xff]  ;;  %v215_v43 = vld [vmem:[%s707_s5 + $0x48] sm:$0xff] }
   0xf   :  { %462 = vmatpush3.bf16.msra.mxu0 %v461_v33  ;;  %v470_v41 = vpack.c.bf16 %v213_v40, %v212_v39  ;;  %v473_v44 = vpack.c.bf16 %v215_v43, %v214_v42  ;;  %v216_v45 = vld [vmem:[%s707_s5 + $0x50] sm:$0xff]  ;;  %v217_v46 = vld [vmem:[%s707_s5 + $0x58] sm:$0xff]  ;;  %v218_v48 = vld [vmem:[%s707_s5 + $0x60] sm:$0xff] }
  0x10   :  { %463 = vmatprep.subr.bf16.mxu0 %v512_v2  ;;  %v476_v47 = vpack.c.bf16 %v217_v46, %v216_v45  ;;  %v219_v49 = vld [vmem:[%s707_s5 + $0x68] sm:$0xff]  ;;  %v315_v51 = vld [vmem:[%s704_s2] ss:$0 sm:$0xff]  ;;  %v220_v56 = vld [vmem:[%s707_s5 + $0x70] sm:$0xff] }
  0x11   :  { %447 = vmatpush3.bf16.msra.mxu1 %v446_v17  ;;  %v479_v50 = vpack.c.bf16 %v219_v49, %v218_v48  ;;  %v221_v57 = vld [vmem:[%s707_s5 + $0x78] sm:$0xff]  ;;  %v317_v59 = vld [vmem:[%s706_s4] ss:$0 sm:$0xff]  ;;  %s488_s5 = scalar_lea.vmem %s308_s23, 128 }
  0x12   :  { %448 = vmatprep.subr.bf16.mxu1 %v512_v2  ;;  %v482_v58 = vpack.c.bf16 %v221_v57, %v220_v56  ;;  %v318_v0 = vld [vmem:[%s708_s6] ss:$0 sm:$0xff]  ;;  %p489_p0 = scmp.ne.s32.totalorder %s308_s23, %s488_s5  ;;  %p494_p2 = scmp.lt.s32.totalorder %s488_s5, %s488_s5 }
  0x13   :  { %465 = vmatpush3.bf16.msra.mxu0 %v464_v35 }
  0x14   :  { %466 = vmatprep.subr.bf16.mxu0 %v512_v2  ;;  %p495_p3 = por %p494_p2, %p493_p1 }
  0x15   :  { %450 = vmatpush3.bf16.msra.mxu1 %v449_v20 }
  0x16   :  { %451 = vmatprep.subr.bf16.mxu1 %v512_v2  ;;  %p496_p4 = pnand %p495_p3, %p489_p0 }
  0x17   :  { %468 = vmatpush3.bf16.msra.mxu0 %v467_v38 }
  0x18   :  { %469 = vmatprep.subr.bf16.mxu0 %v512_v2 }
  0x19   :  { %453 = vmatpush3.bf16.msra.mxu1 %v452_v23 }
  0x1a   :  { %454 = vmatprep.subr.bf16.mxu1 %v512_v2 }
  0x1b   :  { %471 = vmatpush3.bf16.msra.mxu0 %v470_v41 }
  0x1c   :  { %472 = vmatprep.subr.bf16.mxu0 %v512_v2 }
  0x1d   :  { %456 = vmatpush3.bf16.msra.mxu1 %v455_v26 }
  0x1e   :  { %457 = vmatprep.subr.bf16.mxu1 %v512_v2 }
  0x1f   :  { %474 = vmatpush3.bf16.msra.mxu0 %v473_v44 }
  0x20   :  { %475 = vmatprep.subr.bf16.mxu0 %v512_v2 }
  0x21   :  { %459 = vmatpush3.bf16.msra.mxu1 %v458_v29 }
  0x23   :  { %477 = vmatpush3.bf16.msra.mxu0 %v476_v47 }
  0x24   :  { %478 = vmatprep.subr.bf16.mxu0 %v512_v2 }
  0x27   :  { %480 = vmatpush3.bf16.msra.mxu0 %v479_v50 }
  0x28   :  { %481 = vmatprep.subr.bf16.mxu0 %v512_v2 }
  0x2b   :  { %483 = vmatpush3.bf16.msra.mxu0 %v482_v58 }
  0xda   :  { %v107_v52 = vpop.f32.mrb[0].mxu0 }
  0xdb   :  { %v108_v53 = vadd.f32 %v315_v51, %v107_v52  ;;  %v362_v54 = vpop.f32.mrb[1].mxu0 }
  0xdd   :  { %v111_v55 = vmax.f32 %v108_v53, 0.0 }
  0xdf   :  { %396 = vmatmul.mubr.f32.vlgmr.msra.gmra.mrb[0].mxu1 %v111_v55 }
 0x1b2   :  { %v201_v60 = vpop.f32.mrb[0].mxu1 }
 0x1b3   :  { %v202_v61 = vadd.f32 %v317_v59, %v201_v60  ;;  %v397_v62 = vpop.f32.mrb[1].mxu1 }
 0x1b5   :  { %v205_v63 = vmax.f32 %v202_v61, 0.0 }
 0x1b7   :  { %431 = vmatmul.mubr.f32.vlgmr.msra.gmra.mrb[2].mxu0 %v205_v63 }
 0x28a   :  { %v295_v1 = vpop.f32.mrb[2].mxu0 }
 0x28b   :  { %v296_v2 = vadd.f32 %v318_v0, %v295_v1  ;;  %v432_v3 = vpop.f32.mrb[3].mxu0 }
 0x28d   :  { %300 = vst.msk [vmem:[#allocation2] sm:$0xff] %vm299_vm2, %v296_v2 }
 0x28e   :  { %499 = shalt.err (!%p496_p4)
}
 0x28f   :  { %s500_s25 = scalar_lea.hbm %s709_s7, 128 }
 0x290   :  { %p501_p5 = scmp.ne.s32.totalorder %s709_s7, %s500_s25  ;;  %p504_p6 = scmp.lt.u32.totalorder %s500_s25, %s709_s7 }
 0x292   :  { %p506_p7 = pnand %p504_p6, %p501_p5 }
 0x294   :  { %509 = shalt.err (!%p506_p7)
}
 0x295   :  { %310 = dma.vmem_to_hbm [thread:$0]  %s308_s23, 128, %s709_s7, [#allocation3]  }
 0x296   :  { %510 = dma.done.wait [#allocation3], 128  }
 0x297   :  { %511 = vsyncadd [#allocation3], 4294967168 }
 0x298   :  { %314 = vsyncpa [#allocation3], 1 }

</bundles_post_ra>
